<compile_context>
chip_gen: v6e
topology: v6e:2x2x1
jax: 0.10.0
libtpu: 0.0.40
codegen_flags: <defaults>
</compile_context>

<pallas_src>
import functools

import jax
import jax.numpy as jnp
from jax.experimental import pallas as pl
from jax.experimental.pallas import tpu as pltpu


def _swish(v):
    return v * jax.nn.sigmoid(v)


def _round_up(v, m):
    return ((v + m - 1) // m) * m


# ----------------------------------------------------------------------------
# Kernel 1: node transform  q^T [1, Nt] = swish( (swish(W1 @ x^T + b1)) . w2 + b2 )
# ----------------------------------------------------------------------------
def _transform_kernel(w1_ref, b1_ref, w2_ref, b2_ref, xT_ref, q_ref):
    # Dense(F, F) on the MXU, lane-dense output [F, Nt].
    h = jnp.dot(w1_ref[...], xT_ref[...],
                preferred_element_type=jnp.float32) + b1_ref[...]      # [F, Nt]
    h = _swish(h)
    # Dense(F, 1) on VPU + sublane reduce (a width-1 MXU matmul would waste
    # MXU columns and produce 1-lane masked stores).
    q = jnp.sum(h * w2_ref[...], axis=0, keepdims=True) + b2_ref[...]  # [1, Nt]
    q_ref[...] = _swish(q)


# ----------------------------------------------------------------------------
# Kernel 2: mu^T [3, Nt] += (vij^T * q_src) @ onehot(dst)  over edge tiles
#           (dst one-hot built in-kernel from int32 indices; lane-dense output;
#            accumulation directly into the VMEM-resident output block)
# ----------------------------------------------------------------------------
def _scatter_kernel(vijT_ref, qsrc_ref, dst_ref, muT_ref, *, node_tile, scatter_dtype):
    i = pl.program_id(0)            # node tile  (parallel)
    j = pl.program_id(1)            # edge tile  (arbitrary / reduction)

    @pl.when(j == 0)
    def _():
        muT_ref[...] = jnp.zeros_like(muT_ref)

    # e_mul_u: scale edge vectors by gathered node scalar q[src].
    mu_ij = (vijT_ref[...] * qsrc_ref[...]).astype(scatter_dtype)      # [3, Et]

    # copy_e_sum restricted to this node tile: one-hot from a single (1, Nt)
    # lane iota vs. the shifted [Et, 1] dst column (no [Et, Nt] iota + add).
    lane_ids = jax.lax.broadcasted_iota(jnp.int32, (1, node_tile), 1)  # [1, Nt]
    dst_local = dst_ref[...] - i * node_tile                           # [Et, 1]
    onehot = (lane_ids == dst_local).astype(scatter_dtype)             # [Et, Nt]

    # Accumulate in f32 directly into the output block (resident across j).
    muT_ref[...] += jnp.dot(mu_ij, onehot,
                            preferred_element_type=jnp.float32)        # [3, Nt]


# ----------------------------------------------------------------------------
# Wrapper
# ----------------------------------------------------------------------------
def _update_coor_impl(x, vij, src, dst, w1, b1, w2, b2, *,
                      node_tile=None, edge_tile=None,
                      scatter_dtype=jnp.float32):
    """Update_coor forward (transform=True, cutoff_network=None, cross_product=False).

    x   : [N, F] node features
    vij : [E, 3] edge vectors
    src, dst : [E] int32 edge endpoints (mu[dst[e]] += vij[e] * q[src[e]])
    w1  : [F, F]  PyTorch nn.Linear layout ([out, in]),  b1: [F]
    w2  : [1, F]  PyTorch nn.Linear layout,              b2: [1]
    scatter_dtype : dtype of the one-hot / mu_ij operands of the scatter
                    matmul (jnp.bfloat16 halves the one-hot stream and doubles
                    MXU throughput; accumulation is always f32).
    returns mu: [N, 3]
    """
    N, F = x.shape
    E = vij.shape[0]
    f32 = jnp.float32

    Nr = _round_up(N, 128)
    if node_tile is None:
        # 1024 amortizes the ~0.35 us grid-step overhead while keeping the
        # [Et, Nt] one-hot transient (4 MiB f32 / 2 MiB bf16 at 1024x1024)
        # within v5e's 16 MiB scoped-VMEM default and v7x's 64 MiB physical.
        node_tile = min(1024, Nr)
        if node_tile == Nr and Nr >= 256:
            # Give the "parallel" node axis >= 2 tiles so v7x's 2 TensorCores
            # both get work (no-op on the v5e/v6e single-core critical path).
            node_tile = _round_up(-(-Nr // 2), 128)
    if edge_tile is None:
        edge_tile = min(1024, _round_up(E, 128))
    Np = _round_up(N, node_tile)
    Ep = _round_up(E, edge_tile)

    # ---- lane-dense (transposed), padded operands --------------------------
    xT = jnp.zeros((F, Np), f32).at[:, :N].set(x.T.astype(f32))
    b1c = b1.astype(f32).reshape(F, 1)
    w2c = jnp.reshape(w2.astype(f32), (F, 1))
    b2c = b2.astype(f32).reshape(1, 1)

    # ---- Kernel 1: q^T = transform(x)^T, tiled over node tiles -------------
    q_row = pl.pallas_call(
        _transform_kernel,
        out_shape=jax.ShapeDtypeStruct((1, Np), f32),
        grid=(Np // node_tile,),
        in_specs=[
            pl.BlockSpec((F, F), lambda i: (0, 0)),
            pl.BlockSpec((F, 1), lambda i: (0, 0)),
            pl.BlockSpec((F, 1), lambda i: (0, 0)),
            pl.BlockSpec((1, 1), lambda i: (0, 0)),
            pl.BlockSpec((F, node_tile), lambda i: (0, i)),
        ],
        out_specs=pl.BlockSpec((1, node_tile), lambda i: (0, i)),
        compiler_params=pltpu.CompilerParams(dimension_semantics=("parallel",)),
    )(w1.astype(f32), b1c, w2c, b2c, xT)

    # ---- src gather: E scalars in plain JAX (fused under jit) --------------
    q_nodes = q_row[0, :N]                                       # [N]
    qsrc = jnp.zeros((1, Ep), f32).at[0, :E].set(q_nodes[src])   # [1, Ep]

    # vij^T kept at 3 sublanes (full-extent second-minor dim is legal).
    # Padded edges have vij = 0 and qsrc = 0, so they contribute nothing
    # regardless of their (zero-filled) dst — keep this invariant.
    vijT = jnp.zeros((3, Ep), f32).at[:, :E].set(vij.T.astype(f32))
    # Note: the (edge_tile, 1) int32 block lane-pads in VMEM to (edge_tile, 128)
    # (~512 KiB per buffer at Et=1024) — accounted for in the VMEM budget above.
    dst_col = jnp.zeros((Ep, 1), jnp.int32).at[:E, 0].set(dst.astype(jnp.int32))

    # ---- Kernel 2: scatter-add over dst, lane-dense output mu^T [3, Np] ----
    # TODO(synk): for large graphs (N, E >> a few thousand) sort edges by dst
    # and switch to PrefetchScalarGridSpec with per-node-tile edge ranges so
    # the scatter is O(E) instead of O(E*N) and edges are not re-streamed per
    # node tile.
    muT = pl.pallas_call(
        functools.partial(_scatter_kernel, node_tile=node_tile,
                          scatter_dtype=scatter_dtype),
        out_shape=jax.ShapeDtypeStruct((3, Np), f32),
        grid=(Np // node_tile, Ep // edge_tile),
        in_specs=[
            pl.BlockSpec((3, edge_tile), lambda i, j: (0, j)),
            pl.BlockSpec((1, edge_tile), lambda i, j: (0, j)),
            pl.BlockSpec((edge_tile, 1), lambda i, j: (j, 0)),
        ],
        out_specs=pl.BlockSpec((3, node_tile), lambda i, j: (0, i)),
        compiler_params=pltpu.CompilerParams(
            dimension_semantics=("parallel", "arbitrary")),
    )(vijT, qsrc, dst_col)

    return muT[:, :N].T                                          # [N, 3]


# Public entry point: jit so the pad/transpose/gather glue and both
# pallas_calls compile into one program (eager dispatch dominates otherwise).
update_coor = jax.jit(_update_coor_impl,
                      static_argnames=("node_tile", "edge_tile", "scatter_dtype"))


# ----------------------------------------------------------------------------
# Pure-JAX reference (PyTorch semantics)
# ----------------------------------------------------------------------------
def reference(x, vij, src, dst, w1, b1, w2, b2):
    h = _swish(x @ w1.T + b1)
    q = _swish(h @ w2.T + b2)                                    # [N, 1]
    mu_ij = vij * q[src]                                         # [E, 3]
    mu = jnp.zeros((x.shape[0], 3), jnp.float32).at[dst].add(mu_ij)
    return mu


def _make_inputs(key, N, F, E):
    k = jax.random.split(key, 8)
    x = jax.random.normal(k[0], (N, F), dtype=jnp.float32)
    vij = jax.random.normal(k[1], (E, 3), dtype=jnp.float32)
    src = jax.random.randint(k[2], (E,), 0, N, dtype=jnp.int32)
    dst = jax.random.randint(k[3], (E,), 0, N, dtype=jnp.int32)
    # Dense params in PyTorch nn.Linear layout: y = x @ W^T + b, W is [out, in].
    w1 = jax.random.normal(k[4], (F, F), dtype=jnp.float32) * (1.0 / jnp.sqrt(F))
    b1 = jax.random.normal(k[5], (F,), dtype=jnp.float32) * 0.1
    w2 = jax.random.normal(k[6], (1, F), dtype=jnp.float32) * (1.0 / jnp.sqrt(F))
    b2 = jax.random.normal(k[7], (1,), dtype=jnp.float32) * 0.1
    return x, vij, src, dst, w1, b1, w2, b2


if __name__ == "__main__":
    key = jax.random.PRNGKey(0)
    key_a, key_b = jax.random.split(key)

    # --- small, single-tile case (module-sized example) ---------------------
    N, F, E = 16, 32, 64        # atoms, atom_features, edges
    args = _make_inputs(key_a, N, F, E)
    # rij is part of the module's forward signature but unused with
    # cutoff_network=None.
    mu = jax.block_until_ready(update_coor(*args))
    mu_ref = reference(*args)
    assert mu.shape == (N, 3)
    # Tolerance covers TPU default (reduced-precision) f32 matmul passes in
    # the XLA reference; the Pallas f32 path accumulates in f32 throughout.
    assert jnp.allclose(mu, mu_ref, rtol=1e-2, atol=1e-3), "f32 mismatch vs reference"

    # bf16 scatter operands (one-hot is exact 0/1 in bf16; mu_ij rounds to
    # bf16 before the MXU, accumulation stays f32) — verify per review.
    mu_bf16 = jax.block_until_ready(update_coor(*args, scatter_dtype=jnp.bfloat16))
    assert jnp.allclose(mu_bf16, mu_ref, rtol=1e-2, atol=1e-2), \
        "bf16 scatter mismatch vs reference"

    # --- multi-tile case (2 node tiles x 5 edge tiles) to exercise the grid --
    N2, F2, E2 = 200, 32, 520
    args2 = _make_inputs(key_b, N2, F2, E2)
    mu2 = jax.block_until_ready(
        update_coor(*args2, node_tile=128, edge_tile=128))
    mu2_ref = reference(*args2)
    assert mu2.shape == (N2, 3)
    assert jnp.allclose(mu2, mu2_ref, rtol=1e-2, atol=1e-3), \
        "multi-tile mismatch vs reference"

    # TODO(synk): cross_product=True branch (transform2 / torch.cross / mix)
    # and the cutoff_network path are not exercised by the default module
    # config; self.comb is never used in forward().
    print("KERNEL_OK")
</pallas_src>

<mosaic_0001>
module attributes {stable_mosaic.version = 11 : i64} {
  func.func @_transform_kernel(%arg0: i32, %arg1: memref<32x32xf32, #tpu.memory_space<vmem>>, %arg2: memref<32x1xf32, #tpu.memory_space<vmem>>, %arg3: memref<32x1xf32, #tpu.memory_space<vmem>>, %arg4: memref<1x1xf32, #tpu.memory_space<vmem>>, %arg5: memref<32x128xf32, #tpu.memory_space<vmem>>, %arg6: memref<1x128xf32, #tpu.memory_space<vmem>>) attributes {dimension_semantics = [#tpu.dimension_semantics<parallel>], iteration_bounds = array<i64: 1>, scalar_prefetch = 0 : i64, scratch_operands = 0 : i64, tpu.core_type = #tpu.core_type<tc>, window_params = [{pipeline_mode = #tpu.pipeline_mode<synchronous>, transform_indices = @transform_0, window_bounds = array<i64: 32, 32>}, {pipeline_mode = #tpu.pipeline_mode<synchronous>, transform_indices = @transform_1, window_bounds = array<i64: 32, 1>}, {pipeline_mode = #tpu.pipeline_mode<synchronous>, transform_indices = @transform_2, window_bounds = array<i64: 32, 1>}, {pipeline_mode = #tpu.pipeline_mode<synchronous>, transform_indices = @transform_3, window_bounds = array<i64: 1, 1>}, {transform_indices = @transform_4, window_bounds = array<i64: 32, 128>}, {transform_indices = @transform_5, window_bounds = array<i64: 1, 128>}]} {
    %c0 = arith.constant 0 : index
    %c0_0 = arith.constant 0 : index
    %0 = vector.load %arg1[%c0, %c0_0] : memref<32x32xf32, #tpu.memory_space<vmem>>, vector<32x32xf32>
    %c0_1 = arith.constant 0 : index
    %c0_2 = arith.constant 0 : index
    %1 = vector.load %arg5[%c0_1, %c0_2] : memref<32x128xf32, #tpu.memory_space<vmem>>, vector<32x128xf32>
    %cst = arith.constant dense<0.000000e+00> : vector<32x128xf32>
    %2 = tpu.matmul %0, %1, %cst {dimension_numbers = #tpu.dot_dimension_numbers<[1], [0], [0], [1], [0, 0, 1, 1], [], []>} : vector<32x32xf32>, vector<32x128xf32>, vector<32x128xf32> -> vector<32x128xf32>
    %c0_3 = arith.constant 0 : index
    %c0_4 = arith.constant 0 : index
    %3 = vector.load %arg2[%c0_3, %c0_4] : memref<32x1xf32, #tpu.memory_space<vmem>>, vector<32x1xf32>
    %4 = vector.broadcast %3 : vector<32x1xf32> to vector<32x128xf32>
    %5 = arith.addf %2, %4 : vector<32x128xf32>
    %6 = arith.negf %5 : vector<32x128xf32>
    %7 = math.exp %6 : vector<32x128xf32>
    %cst_5 = arith.constant 1.000000e+00 : f32
    %8 = vector.broadcast %cst_5 : f32 to vector<32x128xf32>
    %9 = arith.addf %8, %7 : vector<32x128xf32>
    %10 = arith.divf %8, %9 : vector<32x128xf32>
    %11 = arith.mulf %5, %10 : vector<32x128xf32>
    %c0_6 = arith.constant 0 : index
    %c0_7 = arith.constant 0 : index
    %12 = vector.load %arg3[%c0_6, %c0_7] : memref<32x1xf32, #tpu.memory_space<vmem>>, vector<32x1xf32>
    %13 = vector.broadcast %12 : vector<32x1xf32> to vector<32x128xf32>
    %14 = arith.mulf %11, %13 : vector<32x128xf32>
    %cst_8 = arith.constant dense<0.000000e+00> : vector<128xf32>
    %15 = vector.multi_reduction <add>, %14, %cst_8 [0] : vector<32x128xf32> to vector<128xf32>
    %16 = vector.shape_cast %15 : vector<128xf32> to vector<1x128xf32>
    %c0_9 = arith.constant 0 : index
    %c0_10 = arith.constant 0 : index
    %17 = vector.load %arg4[%c0_9, %c0_10] : memref<1x1xf32, #tpu.memory_space<vmem>>, vector<1x1xf32>
    %18 = vector.broadcast %17 : vector<1x1xf32> to vector<1x128xf32>
    %19 = arith.addf %16, %18 : vector<1x128xf32>
    %20 = arith.negf %19 : vector<1x128xf32>
    %21 = math.exp %20 : vector<1x128xf32>
    %cst_11 = arith.constant 1.000000e+00 : f32
    %22 = vector.broadcast %cst_11 : f32 to vector<1x128xf32>
    %23 = arith.addf %22, %21 : vector<1x128xf32>
    %24 = arith.divf %22, %23 : vector<1x128xf32>
    %25 = arith.mulf %19, %24 : vector<1x128xf32>
    %c0_12 = arith.constant 0 : index
    %c0_13 = arith.constant 0 : index
    %26 = vector.load %arg6[%c0_12, %c0_13] : memref<1x128xf32, #tpu.memory_space<vmem>>, vector<1x128xf32>
    tpu.vector_store %arg6[%c0_12, %c0_13], %25 {strides = array<i32>} : memref<1x128xf32, #tpu.memory_space<vmem>>, vector<1x128xf32>,
    return
  }
  func.func @transform_0(%arg0: i32) -> (i32, i32) {
    %c0_i32 = arith.constant 0 : i32
    %c0_i32_0 = arith.constant 0 : i32
    %c0_i32_1 = arith.constant 0 : i32
    return %c0_i32, %c0_i32_0 : i32, i32
  }
  func.func @transform_1(%arg0: i32) -> (i32, i32) {
    %c0_i32 = arith.constant 0 : i32
    %c0_i32_0 = arith.constant 0 : i32
    %c0_i32_1 = arith.constant 0 : i32
    return %c0_i32, %c0_i32_0 : i32, i32
  }
  func.func @transform_2(%arg0: i32) -> (i32, i32) {
    %c0_i32 = arith.constant 0 : i32
    %c0_i32_0 = arith.constant 0 : i32
    %c0_i32_1 = arith.constant 0 : i32
    return %c0_i32, %c0_i32_0 : i32, i32
  }
  func.func @transform_3(%arg0: i32) -> (i32, i32) {
    %c0_i32 = arith.constant 0 : i32
    %c0_i32_0 = arith.constant 0 : i32
    %c0_i32_1 = arith.constant 0 : i32
    return %c0_i32, %c0_i32_0 : i32, i32
  }
  func.func @transform_4(%arg0: i32) -> (i32, i32) {
    %c0_i32 = arith.constant 0 : i32
    %c0_i32_0 = arith.constant 0 : i32
    return %c0_i32, %arg0 : i32, i32
  }
  func.func @transform_5(%arg0: i32) -> (i32, i32) {
    %c0_i32 = arith.constant 0 : i32
    %c0_i32_0 = arith.constant 0 : i32
    return %c0_i32, %arg0 : i32, i32
  }
}

module attributes {stable_mosaic.version = 11 : i64} {
  func.func @_scatter_kernel(%arg0: i32, %arg1: i32, %arg2: memref<3x128xf32, #tpu.memory_space<vmem>>, %arg3: memref<1x128xf32, #tpu.memory_space<vmem>>, %arg4: memref<128x1xi32, #tpu.memory_space<vmem>>, %arg5: memref<3x128xf32, #tpu.memory_space<vmem>>) attributes {dimension_semantics = [#tpu.dimension_semantics<parallel>, #tpu.dimension_semantics<arbitrary>], iteration_bounds = array<i64: 1, 1>, scalar_prefetch = 0 : i64, scratch_operands = 0 : i64, tpu.core_type = #tpu.core_type<tc>, window_params = [{transform_indices = @transform_0, window_bounds = array<i64: 3, 128>}, {transform_indices = @transform_1, window_bounds = array<i64: 1, 128>}, {transform_indices = @transform_2, window_bounds = array<i64: 128, 1>}, {transform_indices = @transform_3, window_bounds = array<i64: 3, 128>}]} {
    %c0_i32 = arith.constant 0 : i32
    %0 = arith.cmpi eq, %arg1, %c0_i32 : i32
    %1 = arith.extui %0 : i1 to i32
    %c0_i32_0 = arith.constant 0 : i32
    %2 = arith.cmpi ne, %1, %c0_i32_0 : i32
    scf.if %2 {
      %cst_10 = arith.constant 0.000000e+00 : f32
      %21 = vector.broadcast %cst_10 : f32 to vector<3x128xf32>
      %c0_11 = arith.constant 0 : index
      %c0_12 = arith.constant 0 : index
      %22 = vector.load %arg5[%c0_11, %c0_12] : memref<3x128xf32, #tpu.memory_space<vmem>>, vector<3x128xf32>
      tpu.vector_store %arg5[%c0_11, %c0_12], %21 {strides = array<i32>} : memref<3x128xf32, #tpu.memory_space<vmem>>, vector<3x128xf32>,
    } else {
    }
    %c0 = arith.constant 0 : index
    %c0_1 = arith.constant 0 : index
    %3 = vector.load %arg2[%c0, %c0_1] : memref<3x128xf32, #tpu.memory_space<vmem>>, vector<3x128xf32>
    %c0_2 = arith.constant 0 : index
    %c0_3 = arith.constant 0 : index
    %4 = vector.load %arg3[%c0_2, %c0_3] : memref<1x128xf32, #tpu.memory_space<vmem>>, vector<1x128xf32>
    %5 = vector.broadcast %4 : vector<1x128xf32> to vector<3x128xf32>
    %6 = arith.mulf %3, %5 : vector<3x128xf32>
    %7 = tpu.iota {dimensions = array<i32: 1>} : vector<1x128xi32>
    %c0_4 = arith.constant 0 : index
    %c0_5 = arith.constant 0 : index
    %8 = vector.load %arg4[%c0_4, %c0_5] : memref<128x1xi32, #tpu.memory_space<vmem>>, vector<128x1xi32>
    %c128_i32 = arith.constant 128 : i32
    %9 = arith.muli %arg0, %c128_i32 : i32
    %10 = vector.broadcast %9 : i32 to vector<128x1xi32>
    %11 = arith.subi %8, %10 : vector<128x1xi32>
    %12 = vector.broadcast %7 : vector<1x128xi32> to vector<128x128xi32>
    %13 = vector.broadcast %11 : vector<128x1xi32> to vector<128x128xi32>
    %14 = arith.cmpi eq, %12, %13 : vector<128x128xi32>
    %15 = arith.extui %14 : vector<128x128xi1> to vector<128x128xi32>
    %16 = arith.sitofp %15 : vector<128x128xi32> to vector<128x128xf32>
    %c0_6 = arith.constant 0 : index
    %c0_7 = arith.constant 0 : index
    %17 = vector.load %arg5[%c0_6, %c0_7] : memref<3x128xf32, #tpu.memory_space<vmem>>, vector<3x128xf32>
    %cst = arith.constant dense<0.000000e+00> : vector<3x128xf32>
    %18 = tpu.matmul %6, %16, %cst {dimension_numbers = #tpu.dot_dimension_numbers<[1], [0], [0], [1], [0, 0, 1, 1], [], []>} : vector<3x128xf32>, vector<128x128xf32>, vector<3x128xf32> -> vector<3x128xf32>
    %19 = arith.addf %17, %18 : vector<3x128xf32>
    %c0_8 = arith.constant 0 : index
    %c0_9 = arith.constant 0 : index
    %20 = vector.load %arg5[%c0_8, %c0_9] : memref<3x128xf32, #tpu.memory_space<vmem>>, vector<3x128xf32>
    tpu.vector_store %arg5[%c0_8, %c0_9], %19 {strides = array<i32>} : memref<3x128xf32, #tpu.memory_space<vmem>>, vector<3x128xf32>,
    return
  }
  func.func @transform_0(%arg0: i32, %arg1: i32) -> (i32, i32) {
    %c0_i32 = arith.constant 0 : i32
    %c0_i32_0 = arith.constant 0 : i32
    return %c0_i32, %arg1 : i32, i32
  }
  func.func @transform_1(%arg0: i32, %arg1: i32) -> (i32, i32) {
    %c0_i32 = arith.constant 0 : i32
    %c0_i32_0 = arith.constant 0 : i32
    return %c0_i32, %arg1 : i32, i32
  }
  func.func @transform_2(%arg0: i32, %arg1: i32) -> (i32, i32) {
    %c0_i32 = arith.constant 0 : i32
    %c0_i32_0 = arith.constant 0 : i32
    return %arg1, %c0_i32 : i32, i32
  }
  func.func @transform_3(%arg0: i32, %arg1: i32) -> (i32, i32) {
    %c0_i32 = arith.constant 0 : i32
    %c0_i32_0 = arith.constant 0 : i32
    return %c0_i32, %arg0 : i32, i32
  }
}

</mosaic_0001>

<bundles_post_ra>
// kernel: _update_coor_impl.2
= control target key start
LH: loop header
LB: loop body
LE: loop exit
PB: predicated region body
PF: predicated region fallthrough
CT: control target
= control target key end

     0   :  { %v302_v2 = vmov 0   ;;  %vm54_vm0 = vcmask 261120   ;;  %v223_v61 = vlaneseq  ;;  %s387_s4 = inlined_call_operand.vmem [shape: f32[32,128], index: 4, kind: input, shape index: {}]   ;;  %s388_s3 = inlined_call_operand.<no memory space> [shape: f32[1,1], index: 3, kind: input, shape index: {}]   ;;  %s389_s0 = inlined_call_operand.vmem [shape: f32[32,32], index: 0, kind: input, shape index: {}]   ;;  %s390_s1 = inlined_call_operand.vmem [shape: f32[32,1], index: 1, kind: input, shape index: {}]   ;;  %s391_s2 = inlined_call_operand.vmem [shape: f32[32,1], index: 2, kind: input, shape index: {}]   ;;  %s392_s5 = inlined_call_operand.vmem [shape: f32[1,128], index: 5, kind: output, shape index: {}]  }
   0x1   :  { %v29_v0 = vld [vmem:[%s387_s4 + $0x18] sm:$0xff]  ;;  %v28_v1 = vld [vmem:[%s387_s4 + $0x10] sm:$0xff]  ;;  %280 = vset.pattern.permute.xlu0 %v302_v2  ;;  %281 = vset.pattern.permute.xlu1 %v302_v2  ;;  %v10_v3 = vstv %s388_s3  ;;  %v27_v4 = vld [vmem:[%s387_s4 + $0x8] sm:$0xff] }
   0x2   :  { %257 = vmatprep.subr.mxu0 %v29_v0  ;;  %271 = vmatprep.subr.mxu1 %v29_v0  ;;  %11 = vst [vmem:[#allocation2] sm:$0x1] %v10_v3  ;;  %v26_v5 = vld [vmem:[%s387_s4] sm:$0xff]  ;;  %v24_v7 = vld [vmem:[%s389_s0 + $0x10] sm:$0xff]  ;;  %v23_v8 = vld [vmem:[%s389_s0 + $0x8] sm:$0xff] }
   0x3   :  { %258 = vmatpush3.msra.mxu0 %v29_v0  ;;  %275 = vmatpush3.msra.mxu1 %v29_v0  ;;  %v22_v6 = vld [vmem:[%s389_s0] sm:$0xff]  ;;  %v25_v9 = vld [vmem:[%s389_s0 + $0x18] sm:$0xff]  ;;  %v32_v11 = vld [vmem:[%s390_s1 + $0x10] sm:$0xff]  ;;  %v224_v0 = vshrl.u32 %v223_v61, 7 }
   0x4   :  { %259 = vmatprep.subr.mxu0 %v28_v1  ;;  %272 = vmatprep.subr.mxu1 %v28_v1  ;;  %v30_v10 = vld [vmem:[%s390_s1] sm:$0xff]  ;;  %v31_v12 = vld [vmem:[%s390_s1 + $0x8] sm:$0xff]  ;;  %v33_v13 = vld [vmem:[%s390_s1 + $0x18] sm:$0xff] }
   0x5   :  { %260 = vmatpush3.msra.mxu0 %v28_v1  ;;  %276 = vmatpush3.msra.mxu1 %v28_v1  ;;  %v180_v14 = vld [vmem:[%s391_s2] sm:$0xff]  ;;  %v181_v15 = vld [vmem:[%s391_s2 + $0x8] sm:$0xff]  ;;  %v182_v16 = vld [vmem:[%s391_s2 + $0x10] sm:$0xff]  ;;  %v225_v3 = vsub.s32 0, %v224_v0 }
   0x6   :  { %261 = vmatprep.subr.mxu0 %v27_v4  ;;  %273 = vmatprep.subr.mxu1 %v27_v4  ;;  %v183_v17 = vld [vmem:[%s391_s2 + $0x18] sm:$0xff] }
   0x7   :  { %262 = vmatpush3.msra.mxu0 %v27_v4  ;;  %277 = vmatpush3.msra.mxu1 %v27_v4 }
   0x8   :  { %263 = vmatprep.subr.mxu0 %v26_v5  ;;  %274 = vmatprep.subr.mxu1 %v26_v5 }
   0x9   :  { %264 = vmatpush3.msra.mxu0 %v26_v5  ;;  %278 = vmatpush3.msra.mxu1 %v26_v5  ;;  %v217_v18 = vld [vmem:[#allocation2] sm:$0x1] }
   0xa   :  { %265 = vmatprep.mubr.msk.f32.mxu0 %vm54_vm0, %v22_v6  ;;  %268 = vmatprep.mubr.msk.f32.mxu1 %vm54_vm0, %v24_v7 }
   0xb   :  { %266 = vmatmul.mubr.msk.f32.vlgmr.msra.gmra.mxu0 %vm54_vm0, %v23_v8  ;;  %269 = vmatmul.mubr.msk.f32.vlgmr.msra.gmra.mxu1 %vm54_vm0, %v25_v9 }
   0xc   :  { %36 = vperm.xlu0 %280, %v30_v10   ;;  %46 = vperm.xlu1 %281, %v32_v11  }
  0x10   :  { %41 = vperm.xlu0 %280, %v31_v12   ;;  %51 = vperm.xlu1 %281, %v33_v13  }
  0x14   :  { %186 = vperm.xlu0 %280, %v180_v14   ;;  %191 = vperm.xlu1 %281, %v181_v15  }
  0x18   :  { %196 = vperm.xlu0 %280, %v182_v16   ;;  %201 = vperm.xlu1 %281, %v183_v17  }
  0x1c   :  { %220 = vperm.xlu0 %280, %v217_v18  }
  0x87   :  { %v37_v19 = vpop.permute.xlu0 %36  ;;  %v47_v20 = vpop.permute.xlu1 %46 }
  0x8b   :  { %v42_v21 = vpop.permute.xlu0 %41  ;;  %v52_v22 = vpop.permute.xlu1 %51 }
  0x8f   :  { %v187_v44 = vpop.permute.xlu0 %186  ;;  %v192_v48 = vpop.permute.xlu1 %191 }
  0x93   :  { %v197_v55 = vpop.permute.xlu0 %196  ;;  %v202_v58 = vpop.permute.xlu1 %201 }
  0x97   :  { %v221_v5 = vpop.permute.xlu0 %220 }
  0x98   :  { %v226_v7 = vrot.slane %v221_v5, %v225_v3 }
  0xcb   :  { %v267_v23 = vpop.f32.mrf.mxu0  ;;  %v270_v24 = vpop.f32.mrf.mxu1 }
  0xcc   :  { %v139_v25 = vadd.f32 %v267_v23, %v42_v21  ;;  %v149_v26 = vadd.f32 %v270_v24, %v52_v22 }
  0xcd   :  { %v133_v27 = vpop.f32.mrf.mxu0  ;;  %v143_v28 = vpop.f32.mrf.mxu1 }
  0xce   :  { %v245_v29 = vmul.f32 -1.442695, %v139_v25  ;;  %v247_v30 = vmul.f32 -1.442695, %v149_v26  ;;  %v134_v31 = vadd.f32 %v133_v27, %v37_v19  ;;  %v144_v32 = vadd.f32 %v143_v28, %v47_v20 }
  0xd0   :  { %282 = vpow2.f32 %v245_v29  ;;  %v244_v33 = vmul.f32 -1.442695, %v134_v31  ;;  %v246_v34 = vmul.f32 -1.442695, %v144_v32 }
  0xd1   :  { %284 = vpow2.f32 %v247_v30 }
  0xd2   :  { %286 = vpow2.f32 %v244_v33 }
  0xd3   :  { %288 = vpow2.f32 %v246_v34 }
  0xdd   :  { %v283_v35 = vpop.eup %282 }
  0xde   :  { %v285_v36 = vpop.eup %284  ;;  %v165_v37 = vadd.f32 1.0, %v283_v35 }
  0xdf   :  { %v287_v38 = vpop.eup %286  ;;  %v167_v39 = vadd.f32 1.0, %v285_v36 }
  0xe0   :  { %v289_v40 = vpop.eup %288  ;;  %290 = vrcp.f32 %v165_v37  ;;  %v164_v41 = vadd.f32 1.0, %v287_v38 }
  0xe1   :  { %292 = vrcp.f32 %v167_v39  ;;  %v166_v42 = vadd.f32 1.0, %v289_v40 }
  0xe2   :  { %294 = vrcp.f32 %v164_v41 }
  0xe3   :  { %296 = vrcp.f32 %v166_v42 }
  0xed   :  { %v291_v43 = vpop.eup %290 }
  0xee   :  { %v293_v45 = vpop.eup %292  ;;  %v177_v46 = vmul.f32 %v291_v43, %v139_v25 }
  0xef   :  { %v295_v47 = vpop.eup %294  ;;  %v179_v53 = vmul.f32 %v293_v45, %v149_v26 }
  0xf0   :  { %v297_v49 = vpop.eup %296  ;;  %v176_v50 = vmul.f32 %v295_v47, %v134_v31  ;;  %v205_v52 = vmul.f32 %v192_v48, %v177_v46 }
  0xf1   :  { %v178_v51 = vmul.f32 %v297_v49, %v144_v32  ;;  %v207_v59 = vmul.f32 %v202_v58, %v179_v53 }
  0xf2   :  { %v204_v54 = vmul.f32 %v187_v44, %v176_v50 }
  0xf3   :  { %v206_v57 = vmul.f32 %v197_v55, %v178_v51 }
  0xf4   :  { %v208_v56 = vadd.f32 %v205_v52, %v204_v54 }
  0xf6   :  { %v209_v60 = vadd.f32 %v208_v56, %v206_v57 }
  0xf8   :  { %v210_v62 = vadd.f32 %v209_v60, %v207_v59 }
  0xfa   :  { %v211_v63 = vrot.slane %v210_v62, 4 }
  0xfc   :  { %v212_v1 = vadd.f32 %v211_v63, %v210_v62 }
  0xfe   :  { %v213_v2 = vrot.slane %v212_v1, 2 }
 0x100   :  { %v214_v4 = vadd.f32 %v213_v2, %v212_v1 }
 0x102   :  { %v215_v6 = vrot.slane %v214_v4, 1 }
 0x104   :  { %v216_v8 = vadd.f32 %v215_v6, %v214_v4 }
 0x106   :  { %v227_v9 = vadd.f32 %v226_v7, %v216_v8 }
 0x108   :  { %v248_v10 = vmul.f32 -1.442695, %v227_v9 }
 0x10a   :  { %298 = vpow2.f32 %v248_v10 }
 0x117   :  { %v299_v11 = vpop.eup %298 }
 0x118   :  { %v231_v12 = vadd.f32 1.0, %v299_v11 }
 0x11a   :  { %300 = vrcp.f32 %v231_v12 }
 0x127   :  { %v301_v13 = vpop.eup %300 }
 0x128   :  { %v234_v14 = vmul.f32 %v301_v13, %v227_v9 }
 0x12a   :  { %235 = vst [vmem:[%s392_s5] sm:$0x1] %v234_v14 }

// kernel: _update_coor_impl.3
= control target key start
LH: loop header
LB: loop body
LE: loop exit
PB: predicated region body
PF: predicated region fallthrough
CT: control target
= control target key end

     0   :  { %v328_v0 = vmov 0   ;;  %v329_v5 = vmov 0.0   ;;  %vm330_vm0 = vmmov 0   ;;  %v28_v18 = vlaneseq  ;;  %s467_s2 = inlined_call_operand.vmem [shape: s32[128,1], index: 2, kind: input, shape index: {}]   ;;  %s468_s3 = inlined_call_operand.vmem [shape: f32[3,128], index: 3, kind: output, shape index: {}]   ;;  %s469_s0 = inlined_call_operand.vmem [shape: f32[3,128], index: 0, kind: input, shape index: {}]   ;;  %s470_s1 = inlined_call_operand.vmem [shape: f32[1,128], index: 1, kind: input, shape index: {}]  }
   0x1   :  { %327 = vset.pattern.permute.xlu1 %v328_v0  ;;  %326 = vset.pattern.permute.xlu0 %v328_v0  ;;  %v45_v1 = vld [vmem:[%s467_s2 + $0x78] sm:$0xff]  ;;  %v43_v2 = vld [vmem:[%s467_s2 + $0x68] sm:$0xff]  ;;  %v44_v3 = vld [vmem:[%s467_s2 + $0x70] sm:$0xff]  ;;  %18 = vst [vmem:[%s468_s3] sm:$0x7] %v329_v5  ;;  %v331_v22 = vmov 1.0  }
   0x2   :  { %110 = vperm.xlu0 %326, %v45_v1   ;;  %104 = vperm.xlu1 %327, %v43_v2   ;;  %v42_v4 = vld [vmem:[%s467_s2 + $0x60] sm:$0xff]  ;;  %v41_v6 = vld [vmem:[%s467_s2 + $0x58] sm:$0xff]  ;;  %v40_v7 = vld [vmem:[%s467_s2 + $0x50] sm:$0xff]  ;;  %v406_v19 = vand.u32 127, %v28_v18 }
   0x3   :  { %287 = vmatprep.subr.mxu0 %v329_v5  ;;  %v39_v8 = vld [vmem:[%s467_s2 + $0x48] sm:$0xff]  ;;  %v38_v9 = vld [vmem:[%s467_s2 + $0x40] sm:$0xff]  ;;  %v37_v10 = vld [vmem:[%s467_s2 + $0x38] sm:$0xff]  ;;  %319 = vmatprep.mubr.msk.f32.mxu0 %vm330_vm0, %v329_v5 }
   0x4   :  { %v36_v11 = vld [vmem:[%s467_s2 + $0x30] sm:$0xff]  ;;  %v35_v12 = vld [vmem:[%s467_s2 + $0x28] sm:$0xff]  ;;  %v34_v13 = vld [vmem:[%s467_s2 + $0x20] sm:$0xff] }
   0x5   :  { %v33_v14 = vld [vmem:[%s467_s2 + $0x18] sm:$0xff]  ;;  %v32_v15 = vld [vmem:[%s467_s2 + $0x10] sm:$0xff]  ;;  %v31_v16 = vld [vmem:[%s467_s2 + $0x8] sm:$0xff] }
   0x6   :  { %107 = vperm.xlu0 %326, %v44_v3   ;;  %101 = vperm.xlu1 %327, %v42_v4   ;;  %v30_v17 = vld [vmem:[%s467_s2] sm:$0xff] }
   0x7   :  { %v19_v36 = vld [vmem:[%s469_s0] sm:$0x7] }
   0x8   :  { %v237_v37 = vld [vmem:[%s470_s1] ss:$0 sm:$0xff] }
   0x9   :  { %v27_v39 = vmul.f32 %v237_v37, %v19_v36  ;;  %v160_v40 = vld [vmem:[%s468_s3] sm:$0x7] }
   0xa   :  { %98 = vperm.xlu0 %326, %v41_v6   ;;  %95 = vperm.xlu1 %327, %v40_v7  }
   0xe   :  { %92 = vperm.xlu0 %326, %v39_v8   ;;  %89 = vperm.xlu1 %327, %v38_v9  }
  0x12   :  { %86 = vperm.xlu0 %326, %v37_v10   ;;  %83 = vperm.xlu1 %327, %v36_v11  }
  0x16   :  { %80 = vperm.xlu0 %326, %v35_v12   ;;  %77 = vperm.xlu1 %327, %v34_v13  }
  0x1a   :  { %74 = vperm.xlu0 %326, %v33_v14   ;;  %71 = vperm.xlu1 %327, %v32_v15  }
  0x1e   :  { %68 = vperm.xlu0 %326, %v31_v16   ;;  %65 = vperm.xlu1 %327, %v30_v17  }
  0x7d   :  { %v111_v20 = vpop.permute.xlu0 %110  ;;  %v105_v21 = vpop.permute.xlu1 %104 }
  0x7e   :  { %vm127_vm1 = vcmp.eq.s32.totalorder %v406_v19, %v111_v20  ;;  %vm125_vm3 = vcmp.eq.s32.totalorder %v406_v19, %v105_v21 }
  0x7f   :  { %288 = vmatpush3.msk.msra.mxu0 %vm127_vm1, %v331_v22 }
  0x80   :  { %289 = vmatprep.subr.mxu0 %v329_v5 }
  0x81   :  { %v108_v23 = vpop.permute.xlu0 %107  ;;  %v102_v24 = vpop.permute.xlu1 %101 }
  0x82   :  { %vm126_vm2 = vcmp.eq.s32.totalorder %v406_v19, %v108_v23  ;;  %vm124_vm4 = vcmp.eq.s32.totalorder %v406_v19, %v102_v24 }
  0x83   :  { %290 = vmatpush3.msk.msra.mxu0 %vm126_vm2, %v331_v22 }
  0x84   :  { %291 = vmatprep.subr.mxu0 %v329_v5 }
  0x85   :  { %292 = vmatpush3.msk.msra.mxu0 %vm125_vm3, %v331_v22  ;;  %v99_v25 = vpop.permute.xlu0 %98  ;;  %v96_v26 = vpop.permute.xlu1 %95 }
  0x86   :  { %293 = vmatprep.subr.mxu0 %v329_v5  ;;  %vm123_vm5 = vcmp.eq.s32.totalorder %v406_v19, %v99_v25  ;;  %vm122_vm6 = vcmp.eq.s32.totalorder %v406_v19, %v96_v26 }
  0x87   :  { %294 = vmatpush3.msk.msra.mxu0 %vm124_vm4, %v331_v22 }
  0x88   :  { %295 = vmatprep.subr.mxu0 %v329_v5 }
  0x89   :  { %296 = vmatpush3.msk.msra.mxu0 %vm123_vm5, %v331_v22  ;;  %v93_v27 = vpop.permute.xlu0 %92  ;;  %v90_v28 = vpop.permute.xlu1 %89 }
  0x8a   :  { %297 = vmatprep.subr.mxu0 %v329_v5  ;;  %vm121_vm7 = vcmp.eq.s32.totalorder %v406_v19, %v93_v27  ;;  %vm120_vm8 = vcmp.eq.s32.totalorder %v406_v19, %v90_v28 }
  0x8b   :  { %298 = vmatpush3.msk.msra.mxu0 %vm122_vm6, %v331_v22 }
  0x8c   :  { %299 = vmatprep.subr.mxu0 %v329_v5 }
  0x8d   :  { %300 = vmatpush3.msk.msra.mxu0 %vm121_vm7, %v331_v22  ;;  %v87_v29 = vpop.permute.xlu0 %86  ;;  %v84_v30 = vpop.permute.xlu1 %83 }
  0x8e   :  { %301 = vmatprep.subr.mxu0 %v329_v5  ;;  %vm119_vm9 = vcmp.eq.s32.totalorder %v406_v19, %v87_v29  ;;  %vm118_vm10 = vcmp.eq.s32.totalorder %v406_v19, %v84_v30 }
  0x8f   :  { %302 = vmatpush3.msk.msra.mxu0 %vm120_vm8, %v331_v22 }
  0x90   :  { %303 = vmatprep.subr.mxu0 %v329_v5 }
  0x91   :  { %304 = vmatpush3.msk.msra.mxu0 %vm119_vm9, %v331_v22  ;;  %v81_v31 = vpop.permute.xlu0 %80  ;;  %v78_v32 = vpop.permute.xlu1 %77 }
  0x92   :  { %305 = vmatprep.subr.mxu0 %v329_v5  ;;  %vm117_vm11 = vcmp.eq.s32.totalorder %v406_v19, %v81_v31  ;;  %vm116_vm12 = vcmp.eq.s32.totalorder %v406_v19, %v78_v32 }
  0x93   :  { %306 = vmatpush3.msk.msra.mxu0 %vm118_vm10, %v331_v22 }
  0x94   :  { %307 = vmatprep.subr.mxu0 %v329_v5 }
  0x95   :  { %308 = vmatpush3.msk.msra.mxu0 %vm117_vm11, %v331_v22  ;;  %v75_v33 = vpop.permute.xlu0 %74  ;;  %v72_v34 = vpop.permute.xlu1 %71 }
  0x96   :  { %309 = vmatprep.subr.mxu0 %v329_v5  ;;  %vm115_vm13 = vcmp.eq.s32.totalorder %v406_v19, %v75_v33  ;;  %vm114_vm14 = vcmp.eq.s32.totalorder %v406_v19, %v72_v34 }
  0x97   :  { %310 = vmatpush3.msk.msra.mxu0 %vm116_vm12, %v331_v22 }
  0x98   :  { %311 = vmatprep.subr.mxu0 %v329_v5 }
  0x99   :  { %312 = vmatpush3.msk.msra.mxu0 %vm115_vm13, %v331_v22  ;;  %v69_v35 = vpop.permute.xlu0 %68  ;;  %v66_v38 = vpop.permute.xlu1 %65 }
  0x9a   :  { %313 = vmatprep.subr.mxu0 %v329_v5  ;;  %vm113_vm15 = vcmp.eq.s32.totalorder %v406_v19, %v69_v35  ;;  %vm112_vm0 = vcmp.eq.s32.totalorder %v406_v19, %v66_v38 }
  0x9b   :  { %314 = vmatpush3.msk.msra.mxu0 %vm114_vm14, %v331_v22 }
  0x9c   :  { %315 = vmatprep.subr.mxu0 %v329_v5 }
  0x9d   :  { %316 = vmatpush3.msk.msra.mxu0 %vm113_vm15, %v331_v22 }
  0x9e   :  { %317 = vmatprep.subr.mxu0 %v329_v5 }
  0x9f   :  { %318 = vmatpush3.msk.msra.mxu0 %vm112_vm0, %v331_v22 }
  0xa0   :  { %320 = vmatmul.mubr.f32.vlgmr.msra.gmra.mxu0 %v27_v39 }
 0x160   :  { %v227_v41 = vpop.f32.mrf.mxu0 }
 0x161   :  { %v231_v42 = vadd.f32 %v227_v41, %v160_v40 }
 0x162   :  { %v321_v43 = vpop.f32.mrf.mxu0 }
 0x163   :  { %232 = vst [vmem:[%s468_s3] sm:$0x7] %v231_v42 }

</bundles_post_ra>
